<compile_context>
chip_gen: v6e
topology: v6e:2x2x1
jax: 0.10.0
libtpu: 0.0.40
codegen_flags: <defaults>
</compile_context>

<pallas_src>
from typing import NamedTuple

import jax
import jax.numpy as jnp
from jax.experimental import pallas as pl
from jax.experimental.pallas import tpu as pltpu

LN_EPS = 1e-5          # torch.nn.LayerNorm default
TM_MAX = 256           # max batch-tile rows per grid step


def _round_up(n, m):
    return (n + m - 1) // m * m


def _pick_tile(batch):
    """Batch tile: <= TM_MAX, multiple of 8, and >= 2 grid steps whenever the
    batch allows (so dimension_semantics=("parallel",) can shard the batch
    across v7x's two TensorCores)."""
    b = max(int(batch), 1)
    half = _round_up((b + 1) // 2, 8)
    return min(TM_MAX, max(8, half))


class KernelMeta(NamedTuple):
    rows: int           # total rows of the packed gather table (padded)
    off_user: int
    off_gender: int
    off_item: int
    off_source: int


# ---------------------------------------------------------------------------
# Kernel
# ---------------------------------------------------------------------------
def make_kernel(meta: KernelMeta, tm: int, mm_dtype=jnp.bfloat16):
    rows = meta.rows

    def _ln(h):
        # LayerNorm without affine (affine folded into the next Linear).
        # E[x^2] - E[x]^2 variance: one fewer full-width elementwise pass.
        mu = jnp.mean(h, axis=-1, keepdims=True)
        ms = jnp.mean(h * h, axis=-1, keepdims=True)
        var = ms - mu * mu
        return (h - mu) * jax.lax.rsqrt(var + LN_EPS)

    def kernel(user_ref, items_ref, g_ref, aux_ref,
               w1_ref, b1_ref, w2_ref, b2_ref, w3_ref, b3_ref,
               w4_ref, b4_ref, o_ref):
        user = user_ref[...]                     # [tm, 3] f32: uid, gid, age
        items = items_ref[...]                   # [tm, 3] f32: iid, sid, dur
        uid = user[:, 0:1].astype(jnp.int32)
        gid = user[:, 1:2].astype(jnp.int32)
        age = user[:, 2:3]
        iid = items[:, 0:1].astype(jnp.int32)
        sid = items[:, 1:2].astype(jnp.int32)
        dur = items[:, 2:3]

        # ---- fused embedding gather + concat: ONE bf16 MXU matmul against the
        # packed table G (user/gender/item+pretrained/source, each in its
        # concat column slot).
        r_iota = jax.lax.broadcasted_iota(jnp.int32, (tm, rows), 1)
        sel = ((r_iota == uid + meta.off_user)
               | (r_iota == gid + meta.off_gender)
               | (r_iota == iid + meta.off_item)
               | (r_iota == sid + meta.off_source))
        # bool -> f32 -> bf16 (0/1 exact in both; avoids relying on a direct
        # i1->bf16 convert path).
        a = sel.astype(jnp.float32).astype(mm_dtype)
        x = jnp.dot(a, g_ref[...], preferred_element_type=jnp.float32)  # [tm,256]

        # age / dur Linear(1,8) + biases: exact f32 rank-1 VPU updates.
        x = (x + age * aux_ref[0:1, :]
             + dur * aux_ref[1:2, :]
             + aux_ref[2:3, :])

        # ---- (Dropout = identity) -> LayerNorm -> Linear(folded affine) -> SiLU
        def block(h, w_ref, b_ref):
            hn = _ln(h)
            y = jnp.dot(hn.astype(mm_dtype), w_ref[...],
                        preferred_element_type=jnp.float32) + b_ref[...]
            return y * jax.nn.sigmoid(y)         # SiLU in f32 (EUP)

        h = block(x, w1_ref, b1_ref)             # [tm, 256]
        h = block(h, w2_ref, b2_ref)             # [tm, 128]
        h = block(h, w3_ref, b3_ref)             # [tm, 64]

        # ---- final Linear(64, 1): VPU broadcast-mul + lane reduce (no MXU).
        # Stored as a [tm, 1] column -> only 4 B/row of HBM writeback.
        hn = _ln(h)
        o_ref[...] = (jnp.sum(hn * w4_ref[...], axis=-1, keepdims=True)
                      + b4_ref[...])

    return kernel


# ---------------------------------------------------------------------------
# Param preparation (done once, outside jit)
# ---------------------------------------------------------------------------
def prepare_kernel_params(p, matmul_dtype=jnp.bfloat16):
    user_emb = p["user_emb"]
    gender_emb = p["gender_emb"]
    item_emb = p["item_emb"]
    pre_emb = p["pretrained_emb"]
    source_emb = p["source_emb"]
    age_w, age_b = p["age_w"], p["age_b"]
    dur_w, dur_b = p["dur_w"], p["dur_b"]

    du, dg, da = user_emb.shape[1], gender_emb.shape[1], age_w.shape[1]
    di, dp = item_emb.shape[1], pre_emb.shape[1]
    ds, dd = source_emb.shape[1], dur_w.shape[1]
    emb = du + dg + da + di + dp + ds + dd                     # 256

    # column slots (torch concat order)
    c_user = 0
    c_gender = c_user + du
    c_age = c_gender + dg
    c_item = c_age + da
    c_pre = c_item + di
    c_source = c_pre + dp
    c_dur = c_source + ds

    # row slots (each id family padded to a multiple of 8 rows)
    n_user = _round_up(user_emb.shape[0], 8)
    n_gender = _round_up(gender_emb.shape[0], 8)
    n_item = _round_up(item_emb.shape[0], 8)
    n_source = _round_up(source_emb.shape[0], 8)
    off_user = 0
    off_gender = off_user + n_user
    off_item = off_gender + n_gender
    off_source = off_item + n_item
    rows = _round_up(off_source + n_source, 8)

    G = jnp.zeros((rows, emb), jnp.float32)
    G = G.at[off_user:off_user + user_emb.shape[0], c_user:c_user + du].set(user_emb)
    G = G.at[off_gender:off_gender + gender_emb.shape[0], c_gender:c_gender + dg].set(gender_emb)
    G = G.at[off_item:off_item + item_emb.shape[0], c_item:c_item + di].set(item_emb)
    G = G.at[off_item:off_item + pre_emb.shape[0], c_pre:c_pre + dp].set(pre_emb)
    G = G.at[off_source:off_source + source_emb.shape[0], c_source:c_source + ds].set(source_emb)

    # age/dur Linear(1,8) weights + biases stay exact f32 (rank-1 VPU path).
    aux = jnp.zeros((8, emb), jnp.float32)
    aux = aux.at[0, c_age:c_age + da].set(age_w[0])
    aux = aux.at[1, c_dur:c_dur + dd].set(dur_w[0])
    aux = aux.at[2, c_age:c_age + da].set(age_b[0])
    aux = aux.at[2, c_dur:c_dur + dd].set(dur_b[0])

    # Fold each LayerNorm affine into the following Linear:
    #   (ln(h)*g + c) @ W + b == ln(h) @ (g^T * W) + (c @ W + b)
    (g1, c1, w1, b1, g2, c2, w2, b2,
     g3, c3, w3, b3, g4, c4, w4, b4) = p["mlp"]

    def fold(g, c, w, b):
        return g.reshape(-1, 1) * w, c @ w + b

    w1f, b1f = fold(g1, c1, w1, b1)
    w2f, b2f = fold(g2, c2, w2, b2)
    w3f, b3f = fold(g3, c3, w3, b3)
    w4f, b4f = fold(g4, c4, w4, b4)            # [64,1], [1,1]

    kp = {
        "gather": G.astype(matmul_dtype),                   # bf16 MXU operand
        "aux": aux,                                         # f32 rank-1 rows
        "w1": w1f.astype(matmul_dtype), "b1": b1f.astype(jnp.float32),
        "w2": w2f.astype(matmul_dtype), "b2": b2f.astype(jnp.float32),
        "w3": w3f.astype(matmul_dtype), "b3": b3f.astype(jnp.float32),
        "w4_row": w4f.T.astype(jnp.float32),                # [1,64] for VPU mul + reduce
        "b4": b4f.astype(jnp.float32),                      # [1,1]
    }
    meta = KernelMeta(rows=rows,
                      off_user=off_user, off_gender=off_gender,
                      off_item=off_item, off_source=off_source)
    return kp, meta


# ---------------------------------------------------------------------------
# Forward (Pallas)
# ---------------------------------------------------------------------------
def _recsys_forward_impl(meta: KernelMeta, kp, user, items):
    B = user.shape[0]
    tm = _pick_tile(B)
    b_pad = _round_up(max(B, 1), tm)

    # Pass raw [B,3] f32 tensors; casts / column slicing happen in-kernel.
    user_p = jnp.pad(user.astype(jnp.float32), ((0, b_pad - B), (0, 0)))
    items_p = jnp.pad(items.astype(jnp.float32), ((0, b_pad - B), (0, 0)))

    tile_map = lambda i: (i, 0)
    resident = lambda shape: pl.BlockSpec(shape, lambda i: (0, 0))  # stays in VMEM

    out = pl.pallas_call(
        make_kernel(meta, tm),
        out_shape=jax.ShapeDtypeStruct((b_pad, 1), jnp.float32),
        grid=(b_pad // tm,),
        in_specs=[
            pl.BlockSpec((tm, 3), tile_map),                # user rows (streamed)
            pl.BlockSpec((tm, 3), tile_map),                # item rows (streamed)
            resident(kp["gather"].shape),
            resident(kp["aux"].shape),
            resident(kp["w1"].shape), resident(kp["b1"].shape),
            resident(kp["w2"].shape), resident(kp["b2"].shape),
            resident(kp["w3"].shape), resident(kp["b3"].shape),
            resident(kp["w4_row"].shape), resident(kp["b4"].shape),
        ],
        out_specs=pl.BlockSpec((tm, 1), tile_map),
        compiler_params=pltpu.CompilerParams(
            dimension_semantics=("parallel",),              # v7x: both TCs split the batch
            vmem_limit_bytes=32 * 1024 * 1024),
    )(user_p, items_p, kp["gather"], kp["aux"], kp["w1"], kp["b1"],
      kp["w2"], kp["b2"], kp["w3"], kp["b3"], kp["w4_row"], kp["b4"])

    return out[:B, 0]                                        # matches torch .squeeze()


recsys_forward = jax.jit(_recsys_forward_impl, static_argnums=(0,))


# ---------------------------------------------------------------------------
# Torch-faithful params + pure-JAX reference (exact module semantics, f32)
# ---------------------------------------------------------------------------
def init_params(key,
                user_size=100, item_size=200, source_size=10,
                user_emb_size=64, item_emb_size=64, source_emb_size=8,
                gender_emb_size=8, duration_emb_size=8, age_emb_size=8,
                pretrained_dim=96):
    ks = iter(jax.random.split(key, 32))

    def rnd(shape, scale=0.05):
        return (scale * jax.random.normal(next(ks), shape)).astype(jnp.float32)

    emb_size = (user_emb_size + item_emb_size + source_emb_size +
                gender_emb_size + duration_emb_size + age_emb_size +
                pretrained_dim)  # 256

    p = {
        "user_emb": rnd((user_size, user_emb_size)),
        "item_emb": rnd((item_size, item_emb_size)),
        "source_emb": rnd((source_size, source_emb_size)),
        "gender_emb": rnd((3, gender_emb_size)),
        "pretrained_emb": rnd((item_size, pretrained_dim)),
        "age_w": rnd((1, age_emb_size)),
        "age_b": rnd((1, age_emb_size)),
        "dur_w": rnd((1, duration_emb_size)),
        "dur_b": rnd((1, duration_emb_size)),
    }

    def ln(dim):
        return (jnp.ones((1, dim), jnp.float32) + rnd((1, dim), 0.01),
                rnd((1, dim), 0.01))

    g1, c1 = ln(emb_size)
    g2, c2 = ln(256)
    g3, c3 = ln(128)
    g4, c4 = ln(64)
    p["mlp"] = (
        g1, c1, rnd((emb_size, 256)), rnd((1, 256)),
        g2, c2, rnd((256, 128)), rnd((1, 128)),
        g3, c3, rnd((128, 64)), rnd((1, 64)),
        g4, c4, rnd((64, 1)), rnd((1, 1)),
    )
    return p


def _layernorm_affine(h, g, b):
    mu = jnp.mean(h, axis=-1, keepdims=True)
    var = jnp.mean(jnp.square(h - mu), axis=-1, keepdims=True)
    return (h - mu) * jax.lax.rsqrt(var + LN_EPS) * g + b


def _silu(h):
    return h * jax.nn.sigmoid(h)


def _embed_and_concat(params, user, items):
    uid = user[:, 0].astype(jnp.int32)
    gid = user[:, 1].astype(jnp.int32)
    age = user[:, 2:3].astype(jnp.float32)
    iid = items[:, 0].astype(jnp.int32)
    sid = items[:, 1].astype(jnp.int32)
    dur = items[:, 2:3].astype(jnp.float32)

    user_e = jnp.take(params["user_emb"], uid, axis=0)
    gender_e = jnp.take(params["gender_emb"], gid, axis=0)
    age_e = age @ params["age_w"] + params["age_b"]
    item_e = jnp.take(params["item_emb"], iid, axis=0)
    pre_e = jnp.take(params["pretrained_emb"], iid, axis=0)
    source_e = jnp.take(params["source_emb"], sid, axis=0)
    dur_e = dur @ params["dur_w"] + params["dur_b"]
    return jnp.concatenate(
        [user_e, gender_e, age_e, item_e, pre_e, source_e, dur_e], axis=-1)


def recsys_forward_ref(params, user, items):
    """Pure-JAX f32 reference with exact torch-module semantics (eval mode)."""
    x = _embed_and_concat(params, user, items)
    (g1, c1, w1, b1, g2, c2, w2, b2,
     g3, c3, w3, b3, g4, c4, w4, b4) = params["mlp"]
    h = _silu(_layernorm_affine(x, g1, c1) @ w1 + b1)
    h = _silu(_layernorm_affine(h, g2, c2) @ w2 + b2)
    h = _silu(_layernorm_affine(h, g3, c3) @ w3 + b3)
    h = _layernorm_affine(h, g4, c4) @ w4 + b4
    return jnp.squeeze(h, axis=-1)


# ---------------------------------------------------------------------------
if __name__ == "__main__":
    key = jax.random.PRNGKey(0)
    k_param, k_uid, k_gid, k_age, k_iid, k_sid, k_dur = jax.random.split(key, 7)

    B = 8
    user_size, item_size, source_size = 100, 200, 10

    params = init_params(k_param, user_size=user_size,
                         item_size=item_size, source_size=source_size)
    kparams, meta = prepare_kernel_params(params)

    uid = jax.random.randint(k_uid, (B,), 0, user_size).astype(jnp.float32)
    gid = jax.random.randint(k_gid, (B,), 0, 3).astype(jnp.float32)
    age = jax.random.uniform(k_age, (B,), minval=18.0, maxval=65.0)
    iid = jax.random.randint(k_iid, (B,), 0, item_size).astype(jnp.float32)
    sid = jax.random.randint(k_sid, (B,), 0, source_size).astype(jnp.float32)
    dur = jax.random.uniform(k_dur, (B,), minval=0.0, maxval=300.0)

    user = jnp.stack([uid, gid, age], axis=1)    # [B, 3]
    items = jnp.stack([iid, sid, dur], axis=1)   # [B, 3]

    out = recsys_forward(meta, kparams, user, items)
    out = jax.block_until_ready(out)

    ref = recsys_forward_ref(params, user, items)
    assert out.shape == (B,)
    # bf16 matmul operands / bf16 gather table (f32 accumulate, f32 age/dur/bias
    # contributions) => compare against the f32 reference at a tolerance that
    # covers bf16 operand rounding through the hidden layers.
    assert jnp.allclose(out, ref, rtol=2e-2, atol=2e-2), (out, ref)

    print("KERNEL_OK")
</pallas_src>

<mosaic_0001>
module attributes {stable_mosaic.version = 11 : i64} {
  func.func @kernel(%arg0: i32, %arg1: memref<8x3xf32, #tpu.memory_space<vmem>>, %arg2: memref<8x3xf32, #tpu.memory_space<vmem>>, %arg3: memref<328x256xbf16, #tpu.memory_space<vmem>>, %arg4: memref<8x256xf32, #tpu.memory_space<vmem>>, %arg5: memref<256x256xbf16, #tpu.memory_space<vmem>>, %arg6: memref<1x256xf32, #tpu.memory_space<vmem>>, %arg7: memref<256x128xbf16, #tpu.memory_space<vmem>>, %arg8: memref<1x128xf32, #tpu.memory_space<vmem>>, %arg9: memref<128x64xbf16, #tpu.memory_space<vmem>>, %arg10: memref<1x64xf32, #tpu.memory_space<vmem>>, %arg11: memref<1x64xf32, #tpu.memory_space<vmem>>, %arg12: memref<1x1xf32, #tpu.memory_space<vmem>>, %arg13: memref<8x1xf32, #tpu.memory_space<vmem>>) attributes {dimension_semantics = [#tpu.dimension_semantics<parallel>], iteration_bounds = array<i64: 1>, scalar_prefetch = 0 : i64, scratch_operands = 0 : i64, tpu.core_type = #tpu.core_type<tc>, window_params = [{transform_indices = @transform_0, window_bounds = array<i64: 8, 3>}, {transform_indices = @transform_1, window_bounds = array<i64: 8, 3>}, {pipeline_mode = #tpu.pipeline_mode<synchronous>, transform_indices = @transform_2, window_bounds = array<i64: 328, 256>}, {pipeline_mode = #tpu.pipeline_mode<synchronous>, transform_indices = @transform_3, window_bounds = array<i64: 8, 256>}, {pipeline_mode = #tpu.pipeline_mode<synchronous>, transform_indices = @transform_4, window_bounds = array<i64: 256, 256>}, {pipeline_mode = #tpu.pipeline_mode<synchronous>, transform_indices = @transform_5, window_bounds = array<i64: 1, 256>}, {pipeline_mode = #tpu.pipeline_mode<synchronous>, transform_indices = @transform_6, window_bounds = array<i64: 256, 128>}, {pipeline_mode = #tpu.pipeline_mode<synchronous>, transform_indices = @transform_7, window_bounds = array<i64: 1, 128>}, {pipeline_mode = #tpu.pipeline_mode<synchronous>, transform_indices = @transform_8, window_bounds = array<i64: 128, 64>}, {pipeline_mode = #tpu.pipeline_mode<synchronous>, transform_indices = @transform_9, window_bounds = array<i64: 1, 64>}, {pipeline_mode = #tpu.pipeline_mode<synchronous>, transform_indices = @transform_10, window_bounds = array<i64: 1, 64>}, {pipeline_mode = #tpu.pipeline_mode<synchronous>, transform_indices = @transform_11, window_bounds = array<i64: 1, 1>}, {transform_indices = @transform_12, window_bounds = array<i64: 8, 1>}]} {
    %c0 = arith.constant 0 : index
    %c0_0 = arith.constant 0 : index
    %0 = vector.load %arg1[%c0, %c0_0] : memref<8x3xf32, #tpu.memory_space<vmem>>, vector<8x3xf32>
    %c0_1 = arith.constant 0 : index
    %c0_2 = arith.constant 0 : index
    %1 = vector.load %arg2[%c0_1, %c0_2] : memref<8x3xf32, #tpu.memory_space<vmem>>, vector<8x3xf32>
    %2 = vector.extract_strided_slice %0 {offsets = [0, 0], sizes = [8, 1], strides = [1, 1]} : vector<8x3xf32> to vector<8x1xf32>
    %3 = arith.fptosi %2 : vector<8x1xf32> to vector<8x1xi32>
    %4 = vector.extract_strided_slice %0 {offsets = [0, 1], sizes = [8, 1], strides = [1, 1]} : vector<8x3xf32> to vector<8x1xf32>
    %5 = arith.fptosi %4 : vector<8x1xf32> to vector<8x1xi32>
    %6 = vector.extract_strided_slice %0 {offsets = [0, 2], sizes = [8, 1], strides = [1, 1]} : vector<8x3xf32> to vector<8x1xf32>
    %7 = vector.extract_strided_slice %1 {offsets = [0, 0], sizes = [8, 1], strides = [1, 1]} : vector<8x3xf32> to vector<8x1xf32>
    %8 = arith.fptosi %7 : vector<8x1xf32> to vector<8x1xi32>
    %9 = vector.extract_strided_slice %1 {offsets = [0, 1], sizes = [8, 1], strides = [1, 1]} : vector<8x3xf32> to vector<8x1xf32>
    %10 = arith.fptosi %9 : vector<8x1xf32> to vector<8x1xi32>
    %11 = vector.extract_strided_slice %1 {offsets = [0, 2], sizes = [8, 1], strides = [1, 1]} : vector<8x3xf32> to vector<8x1xf32>
    %12 = tpu.iota {dimensions = array<i32: 1>} : vector<8x328xi32>
    %c0_i32 = arith.constant 0 : i32
    %13 = vector.broadcast %c0_i32 : i32 to vector<8x1xi32>
    %14 = arith.addi %3, %13 : vector<8x1xi32>
    %15 = vector.broadcast %14 : vector<8x1xi32> to vector<8x328xi32>
    %16 = arith.cmpi eq, %12, %15 : vector<8x328xi32>
    %c104_i32 = arith.constant 104 : i32
    %17 = vector.broadcast %c104_i32 : i32 to vector<8x1xi32>
    %18 = arith.addi %5, %17 : vector<8x1xi32>
    %19 = vector.broadcast %18 : vector<8x1xi32> to vector<8x328xi32>
    %20 = arith.cmpi eq, %12, %19 : vector<8x328xi32>
    %21 = arith.ori %16, %20 : vector<8x328xi1>
    %c112_i32 = arith.constant 112 : i32
    %22 = vector.broadcast %c112_i32 : i32 to vector<8x1xi32>
    %23 = arith.addi %8, %22 : vector<8x1xi32>
    %24 = vector.broadcast %23 : vector<8x1xi32> to vector<8x328xi32>
    %25 = arith.cmpi eq, %12, %24 : vector<8x328xi32>
    %26 = arith.ori %21, %25 : vector<8x328xi1>
    %c312_i32 = arith.constant 312 : i32
    %27 = vector.broadcast %c312_i32 : i32 to vector<8x1xi32>
    %28 = arith.addi %10, %27 : vector<8x1xi32>
    %29 = vector.broadcast %28 : vector<8x1xi32> to vector<8x328xi32>
    %30 = arith.cmpi eq, %12, %29 : vector<8x328xi32>
    %31 = arith.ori %26, %30 : vector<8x328xi1>
    %32 = arith.extui %31 : vector<8x328xi1> to vector<8x328xi32>
    %33 = arith.sitofp %32 : vector<8x328xi32> to vector<8x328xf32>
    %34 = arith.truncf %33 : vector<8x328xf32> to vector<8x328xbf16>
    %c0_3 = arith.constant 0 : index
    %c0_4 = arith.constant 0 : index
    %35 = vector.load %arg3[%c0_3, %c0_4] : memref<328x256xbf16, #tpu.memory_space<vmem>>, vector<328x256xbf16>
    %cst = arith.constant dense<0.000000e+00> : vector<8x256xf32>
    %36 = tpu.matmul %34, %35, %cst {dimension_numbers = #tpu.dot_dimension_numbers<[1], [0], [0], [1], [0, 0, 1, 1], [], []>} : vector<8x328xbf16>, vector<328x256xbf16>, vector<8x256xf32> -> vector<8x256xf32>
    %c0_5 = arith.constant 0 : index
    %c0_6 = arith.constant 0 : index
    %37 = vector.load %arg4[%c0_5, %c0_6] : memref<8x256xf32, #tpu.memory_space<vmem>>, vector<1x256xf32>
    %38 = vector.broadcast %6 : vector<8x1xf32> to vector<8x256xf32>
    %39 = vector.broadcast %37 : vector<1x256xf32> to vector<8x256xf32>
    %40 = arith.mulf %38, %39 : vector<8x256xf32>
    %41 = arith.addf %36, %40 : vector<8x256xf32>
    %c1 = arith.constant 1 : index
    %c0_7 = arith.constant 0 : index
    %42 = vector.load %arg4[%c1, %c0_7] : memref<8x256xf32, #tpu.memory_space<vmem>>, vector<1x256xf32>
    %43 = vector.broadcast %11 : vector<8x1xf32> to vector<8x256xf32>
    %44 = vector.broadcast %42 : vector<1x256xf32> to vector<8x256xf32>
    %45 = arith.mulf %43, %44 : vector<8x256xf32>
    %46 = arith.addf %41, %45 : vector<8x256xf32>
    %c2 = arith.constant 2 : index
    %c0_8 = arith.constant 0 : index
    %47 = vector.load %arg4[%c2, %c0_8] : memref<8x256xf32, #tpu.memory_space<vmem>>, vector<1x256xf32>
    %48 = vector.broadcast %47 : vector<1x256xf32> to vector<8x256xf32>
    %49 = arith.addf %46, %48 : vector<8x256xf32>
    %cst_9 = arith.constant dense<0.000000e+00> : vector<8xf32>
    %50 = vector.multi_reduction <add>, %49, %cst_9 [1] : vector<8x256xf32> to vector<8xf32>
    %51 = vector.shape_cast %50 : vector<8xf32> to vector<8x1xf32>
    %cst_10 = arith.constant 2.560000e+02 : f32
    %52 = vector.broadcast %cst_10 : f32 to vector<8x1xf32>
    %53 = arith.divf %51, %52 : vector<8x1xf32>
    %54 = arith.mulf %49, %49 : vector<8x256xf32>
    %cst_11 = arith.constant dense<0.000000e+00> : vector<8xf32>
    %55 = vector.multi_reduction <add>, %54, %cst_11 [1] : vector<8x256xf32> to vector<8xf32>
    %56 = vector.shape_cast %55 : vector<8xf32> to vector<8x1xf32>
    %cst_12 = arith.constant 2.560000e+02 : f32
    %57 = vector.broadcast %cst_12 : f32 to vector<8x1xf32>
    %58 = arith.divf %56, %57 : vector<8x1xf32>
    %59 = arith.mulf %53, %53 : vector<8x1xf32>
    %60 = arith.subf %58, %59 : vector<8x1xf32>
    %61 = vector.broadcast %53 : vector<8x1xf32> to vector<8x256xf32>
    %62 = arith.subf %49, %61 : vector<8x256xf32>
    %cst_13 = arith.constant 9.99999974E-6 : f32
    %63 = vector.broadcast %cst_13 : f32 to vector<8x1xf32>
    %64 = arith.addf %60, %63 : vector<8x1xf32>
    %65 = math.rsqrt %64 : vector<8x1xf32>
    %66 = vector.broadcast %65 : vector<8x1xf32> to vector<8x256xf32>
    %67 = arith.mulf %62, %66 : vector<8x256xf32>
    %68 = arith.truncf %67 : vector<8x256xf32> to vector<8x256xbf16>
    %c0_14 = arith.constant 0 : index
    %c0_15 = arith.constant 0 : index
    %69 = vector.load %arg5[%c0_14, %c0_15] : memref<256x256xbf16, #tpu.memory_space<vmem>>, vector<256x256xbf16>
    %cst_16 = arith.constant dense<0.000000e+00> : vector<8x256xf32>
    %70 = tpu.matmul %68, %69, %cst_16 {dimension_numbers = #tpu.dot_dimension_numbers<[1], [0], [0], [1], [0, 0, 1, 1], [], []>} : vector<8x256xbf16>, vector<256x256xbf16>, vector<8x256xf32> -> vector<8x256xf32>
    %c0_17 = arith.constant 0 : index
    %c0_18 = arith.constant 0 : index
    %71 = vector.load %arg6[%c0_17, %c0_18] : memref<1x256xf32, #tpu.memory_space<vmem>>, vector<1x256xf32>
    %72 = vector.broadcast %71 : vector<1x256xf32> to vector<8x256xf32>
    %73 = arith.addf %70, %72 : vector<8x256xf32>
    %74 = arith.negf %73 : vector<8x256xf32>
    %75 = math.exp %74 : vector<8x256xf32>
    %cst_19 = arith.constant 1.000000e+00 : f32
    %76 = vector.broadcast %cst_19 : f32 to vector<8x256xf32>
    %77 = arith.addf %76, %75 : vector<8x256xf32>
    %78 = arith.divf %76, %77 : vector<8x256xf32>
    %79 = arith.mulf %73, %78 : vector<8x256xf32>
    %cst_20 = arith.constant dense<0.000000e+00> : vector<8xf32>
    %80 = vector.multi_reduction <add>, %79, %cst_20 [1] : vector<8x256xf32> to vector<8xf32>
    %81 = vector.shape_cast %80 : vector<8xf32> to vector<8x1xf32>
    %cst_21 = arith.constant 2.560000e+02 : f32
    %82 = vector.broadcast %cst_21 : f32 to vector<8x1xf32>
    %83 = arith.divf %81, %82 : vector<8x1xf32>
    %84 = arith.mulf %79, %79 : vector<8x256xf32>
    %cst_22 = arith.constant dense<0.000000e+00> : vector<8xf32>
    %85 = vector.multi_reduction <add>, %84, %cst_22 [1] : vector<8x256xf32> to vector<8xf32>
    %86 = vector.shape_cast %85 : vector<8xf32> to vector<8x1xf32>
    %cst_23 = arith.constant 2.560000e+02 : f32
    %87 = vector.broadcast %cst_23 : f32 to vector<8x1xf32>
    %88 = arith.divf %86, %87 : vector<8x1xf32>
    %89 = arith.mulf %83, %83 : vector<8x1xf32>
    %90 = arith.subf %88, %89 : vector<8x1xf32>
    %91 = vector.broadcast %83 : vector<8x1xf32> to vector<8x256xf32>
    %92 = arith.subf %79, %91 : vector<8x256xf32>
    %cst_24 = arith.constant 9.99999974E-6 : f32
    %93 = vector.broadcast %cst_24 : f32 to vector<8x1xf32>
    %94 = arith.addf %90, %93 : vector<8x1xf32>
    %95 = math.rsqrt %94 : vector<8x1xf32>
    %96 = vector.broadcast %95 : vector<8x1xf32> to vector<8x256xf32>
    %97 = arith.mulf %92, %96 : vector<8x256xf32>
    %98 = arith.truncf %97 : vector<8x256xf32> to vector<8x256xbf16>
    %c0_25 = arith.constant 0 : index
    %c0_26 = arith.constant 0 : index
    %99 = vector.load %arg7[%c0_25, %c0_26] : memref<256x128xbf16, #tpu.memory_space<vmem>>, vector<256x128xbf16>
    %cst_27 = arith.constant dense<0.000000e+00> : vector<8x128xf32>
    %100 = tpu.matmul %98, %99, %cst_27 {dimension_numbers = #tpu.dot_dimension_numbers<[1], [0], [0], [1], [0, 0, 1, 1], [], []>} : vector<8x256xbf16>, vector<256x128xbf16>, vector<8x128xf32> -> vector<8x128xf32>
    %c0_28 = arith.constant 0 : index
    %c0_29 = arith.constant 0 : index
    %101 = vector.load %arg8[%c0_28, %c0_29] : memref<1x128xf32, #tpu.memory_space<vmem>>, vector<1x128xf32>
    %102 = vector.broadcast %101 : vector<1x128xf32> to vector<8x128xf32>
    %103 = arith.addf %100, %102 : vector<8x128xf32>
    %104 = arith.negf %103 : vector<8x128xf32>
    %105 = math.exp %104 : vector<8x128xf32>
    %cst_30 = arith.constant 1.000000e+00 : f32
    %106 = vector.broadcast %cst_30 : f32 to vector<8x128xf32>
    %107 = arith.addf %106, %105 : vector<8x128xf32>
    %108 = arith.divf %106, %107 : vector<8x128xf32>
    %109 = arith.mulf %103, %108 : vector<8x128xf32>
    %cst_31 = arith.constant dense<0.000000e+00> : vector<8xf32>
    %110 = vector.multi_reduction <add>, %109, %cst_31 [1] : vector<8x128xf32> to vector<8xf32>
    %111 = vector.shape_cast %110 : vector<8xf32> to vector<8x1xf32>
    %cst_32 = arith.constant 1.280000e+02 : f32
    %112 = vector.broadcast %cst_32 : f32 to vector<8x1xf32>
    %113 = arith.divf %111, %112 : vector<8x1xf32>
    %114 = arith.mulf %109, %109 : vector<8x128xf32>
    %cst_33 = arith.constant dense<0.000000e+00> : vector<8xf32>
    %115 = vector.multi_reduction <add>, %114, %cst_33 [1] : vector<8x128xf32> to vector<8xf32>
    %116 = vector.shape_cast %115 : vector<8xf32> to vector<8x1xf32>
    %cst_34 = arith.constant 1.280000e+02 : f32
    %117 = vector.broadcast %cst_34 : f32 to vector<8x1xf32>
    %118 = arith.divf %116, %117 : vector<8x1xf32>
    %119 = arith.mulf %113, %113 : vector<8x1xf32>
    %120 = arith.subf %118, %119 : vector<8x1xf32>
    %121 = vector.broadcast %113 : vector<8x1xf32> to vector<8x128xf32>
    %122 = arith.subf %109, %121 : vector<8x128xf32>
    %cst_35 = arith.constant 9.99999974E-6 : f32
    %123 = vector.broadcast %cst_35 : f32 to vector<8x1xf32>
    %124 = arith.addf %120, %123 : vector<8x1xf32>
    %125 = math.rsqrt %124 : vector<8x1xf32>
    %126 = vector.broadcast %125 : vector<8x1xf32> to vector<8x128xf32>
    %127 = arith.mulf %122, %126 : vector<8x128xf32>
    %128 = arith.truncf %127 : vector<8x128xf32> to vector<8x128xbf16>
    %c0_36 = arith.constant 0 : index
    %c0_37 = arith.constant 0 : index
    %129 = vector.load %arg9[%c0_36, %c0_37] : memref<128x64xbf16, #tpu.memory_space<vmem>>, vector<128x64xbf16>
    %cst_38 = arith.constant dense<0.000000e+00> : vector<8x64xf32>
    %130 = tpu.matmul %128, %129, %cst_38 {dimension_numbers = #tpu.dot_dimension_numbers<[1], [0], [0], [1], [0, 0, 1, 1], [], []>} : vector<8x128xbf16>, vector<128x64xbf16>, vector<8x64xf32> -> vector<8x64xf32>
    %c0_39 = arith.constant 0 : index
    %c0_40 = arith.constant 0 : index
    %131 = vector.load %arg10[%c0_39, %c0_40] : memref<1x64xf32, #tpu.memory_space<vmem>>, vector<1x64xf32>
    %132 = vector.broadcast %131 : vector<1x64xf32> to vector<8x64xf32>
    %133 = arith.addf %130, %132 : vector<8x64xf32>
    %134 = arith.negf %133 : vector<8x64xf32>
    %135 = math.exp %134 : vector<8x64xf32>
    %cst_41 = arith.constant 1.000000e+00 : f32
    %136 = vector.broadcast %cst_41 : f32 to vector<8x64xf32>
    %137 = arith.addf %136, %135 : vector<8x64xf32>
    %138 = arith.divf %136, %137 : vector<8x64xf32>
    %139 = arith.mulf %133, %138 : vector<8x64xf32>
    %cst_42 = arith.constant dense<0.000000e+00> : vector<8xf32>
    %140 = vector.multi_reduction <add>, %139, %cst_42 [1] : vector<8x64xf32> to vector<8xf32>
    %141 = vector.shape_cast %140 : vector<8xf32> to vector<8x1xf32>
    %cst_43 = arith.constant 6.400000e+01 : f32
    %142 = vector.broadcast %cst_43 : f32 to vector<8x1xf32>
    %143 = arith.divf %141, %142 : vector<8x1xf32>
    %144 = arith.mulf %139, %139 : vector<8x64xf32>
    %cst_44 = arith.constant dense<0.000000e+00> : vector<8xf32>
    %145 = vector.multi_reduction <add>, %144, %cst_44 [1] : vector<8x64xf32> to vector<8xf32>
    %146 = vector.shape_cast %145 : vector<8xf32> to vector<8x1xf32>
    %cst_45 = arith.constant 6.400000e+01 : f32
    %147 = vector.broadcast %cst_45 : f32 to vector<8x1xf32>
    %148 = arith.divf %146, %147 : vector<8x1xf32>
    %149 = arith.mulf %143, %143 : vector<8x1xf32>
    %150 = arith.subf %148, %149 : vector<8x1xf32>
    %151 = vector.broadcast %143 : vector<8x1xf32> to vector<8x64xf32>
    %152 = arith.subf %139, %151 : vector<8x64xf32>
    %cst_46 = arith.constant 9.99999974E-6 : f32
    %153 = vector.broadcast %cst_46 : f32 to vector<8x1xf32>
    %154 = arith.addf %150, %153 : vector<8x1xf32>
    %155 = math.rsqrt %154 : vector<8x1xf32>
    %156 = vector.broadcast %155 : vector<8x1xf32> to vector<8x64xf32>
    %157 = arith.mulf %152, %156 : vector<8x64xf32>
    %c0_47 = arith.constant 0 : index
    %c0_48 = arith.constant 0 : index
    %158 = vector.load %arg11[%c0_47, %c0_48] : memref<1x64xf32, #tpu.memory_space<vmem>>, vector<1x64xf32>
    %159 = vector.broadcast %158 : vector<1x64xf32> to vector<8x64xf32>
    %160 = arith.mulf %157, %159 : vector<8x64xf32>
    %cst_49 = arith.constant dense<0.000000e+00> : vector<8xf32>
    %161 = vector.multi_reduction <add>, %160, %cst_49 [1] : vector<8x64xf32> to vector<8xf32>
    %162 = vector.shape_cast %161 : vector<8xf32> to vector<8x1xf32>
    %c0_50 = arith.constant 0 : index
    %c0_51 = arith.constant 0 : index
    %163 = vector.load %arg12[%c0_50, %c0_51] : memref<1x1xf32, #tpu.memory_space<vmem>>, vector<1x1xf32>
    %164 = vector.broadcast %163 : vector<1x1xf32> to vector<8x1xf32>
    %165 = arith.addf %162, %164 : vector<8x1xf32>
    %c0_52 = arith.constant 0 : index
    %c0_53 = arith.constant 0 : index
    %166 = vector.load %arg13[%c0_52, %c0_53] : memref<8x1xf32, #tpu.memory_space<vmem>>, vector<8x1xf32>
    tpu.vector_store %arg13[%c0_52, %c0_53], %165 {strides = array<i32>} : memref<8x1xf32, #tpu.memory_space<vmem>>, vector<8x1xf32>,
    return
  }
  func.func @transform_0(%arg0: i32) -> (i32, i32) {
    %c0_i32 = arith.constant 0 : i32
    %c0_i32_0 = arith.constant 0 : i32
    return %arg0, %c0_i32 : i32, i32
  }
  func.func @transform_1(%arg0: i32) -> (i32, i32) {
    %c0_i32 = arith.constant 0 : i32
    %c0_i32_0 = arith.constant 0 : i32
    return %arg0, %c0_i32 : i32, i32
  }
  func.func @transform_2(%arg0: i32) -> (i32, i32) {
    %c0_i32 = arith.constant 0 : i32
    %c0_i32_0 = arith.constant 0 : i32
    %c0_i32_1 = arith.constant 0 : i32
    return %c0_i32, %c0_i32_0 : i32, i32
  }
  func.func @transform_3(%arg0: i32) -> (i32, i32) {
    %c0_i32 = arith.constant 0 : i32
    %c0_i32_0 = arith.constant 0 : i32
    %c0_i32_1 = arith.constant 0 : i32
    return %c0_i32, %c0_i32_0 : i32, i32
  }
  func.func @transform_4(%arg0: i32) -> (i32, i32) {
    %c0_i32 = arith.constant 0 : i32
    %c0_i32_0 = arith.constant 0 : i32
    %c0_i32_1 = arith.constant 0 : i32
    return %c0_i32, %c0_i32_0 : i32, i32
  }
  func.func @transform_5(%arg0: i32) -> (i32, i32) {
    %c0_i32 = arith.constant 0 : i32
    %c0_i32_0 = arith.constant 0 : i32
    %c0_i32_1 = arith.constant 0 : i32
    return %c0_i32, %c0_i32_0 : i32, i32
  }
  func.func @transform_6(%arg0: i32) -> (i32, i32) {
    %c0_i32 = arith.constant 0 : i32
    %c0_i32_0 = arith.constant 0 : i32
    %c0_i32_1 = arith.constant 0 : i32
    return %c0_i32, %c0_i32_0 : i32, i32
  }
  func.func @transform_7(%arg0: i32) -> (i32, i32) {
    %c0_i32 = arith.constant 0 : i32
    %c0_i32_0 = arith.constant 0 : i32
    %c0_i32_1 = arith.constant 0 : i32
    return %c0_i32, %c0_i32_0 : i32, i32
  }
  func.func @transform_8(%arg0: i32) -> (i32, i32) {
    %c0_i32 = arith.constant 0 : i32
    %c0_i32_0 = arith.constant 0 : i32
    %c0_i32_1 = arith.constant 0 : i32
    return %c0_i32, %c0_i32_0 : i32, i32
  }
  func.func @transform_9(%arg0: i32) -> (i32, i32) {
    %c0_i32 = arith.constant 0 : i32
    %c0_i32_0 = arith.constant 0 : i32
    %c0_i32_1 = arith.constant 0 : i32
    return %c0_i32, %c0_i32_0 : i32, i32
  }
  func.func @transform_10(%arg0: i32) -> (i32, i32) {
    %c0_i32 = arith.constant 0 : i32
    %c0_i32_0 = arith.constant 0 : i32
    %c0_i32_1 = arith.constant 0 : i32
    return %c0_i32, %c0_i32_0 : i32, i32
  }
  func.func @transform_11(%arg0: i32) -> (i32, i32) {
    %c0_i32 = arith.constant 0 : i32
    %c0_i32_0 = arith.constant 0 : i32
    %c0_i32_1 = arith.constant 0 : i32
    return %c0_i32, %c0_i32_0 : i32, i32
  }
  func.func @transform_12(%arg0: i32) -> (i32, i32) {
    %c0_i32 = arith.constant 0 : i32
    %c0_i32_0 = arith.constant 0 : i32
    return %arg0, %c0_i32 : i32, i32
  }
}

</mosaic_0001>

<bundles_post_ra>
// kernel: _recsys_forward_impl.1
= control target key start
LH: loop header
LB: loop body
LE: loop exit
PB: predicated region body
PF: predicated region fallthrough
CT: control target
= control target key end

     0   :  { %s1953_s0 = inlined_call_operand.vmem [shape: f32[8,3], index: 0, kind: input, shape index: {}]   ;;  %s1954_s1 = inlined_call_operand.vmem [shape: f32[8,3], index: 1, kind: input, shape index: {}]   ;;  %s1955_s2 = inlined_call_operand.hbm [shape: bf16[328,256], index: 2, kind: input, shape index: {}]   ;;  %s1956_s3 = inlined_call_operand.hbm [shape: f32[8,256], index: 3, kind: input, shape index: {}]   ;;  %s1957_s4 = inlined_call_operand.hbm [shape: bf16[256,256], index: 4, kind: input, shape index: {}]   ;;  %s1958_s5 = inlined_call_operand.hbm [shape: f32[1,256], index: 5, kind: input, shape index: {}]   ;;  %s1959_s6 = inlined_call_operand.vmem [shape: bf16[256,128], index: 6, kind: input, shape index: {}]   ;;  %s1960_s7 = inlined_call_operand.hbm [shape: f32[1,128], index: 7, kind: input, shape index: {}]   ;;  %s1961_s8 = inlined_call_operand.vmem [shape: bf16[128,64], index: 8, kind: input, shape index: {}]   ;;  %s1962_s9 = inlined_call_operand.hbm [shape: f32[1,64], index: 9, kind: input, shape index: {}]   ;;  %s1963_s10 = inlined_call_operand.hbm [shape: f32[1,64], index: 10, kind: input, shape index: {}]   ;;  %s1964_s11 = inlined_call_operand.<no memory space> [shape: f32[1,1], index: 11, kind: input, shape index: {}]   ;;  %s1965_s12 = inlined_call_operand.vmem [shape: f32[8,1], index: 12, kind: output, shape index: {}]  }
   0x1   :  { %v17_v0 = vstv %s1964_s11 }
   0x2   :  { %18 = vst [vmem:[#allocation2] sm:$0x1] %v17_v0 }
   0x3   :  { %19 = vsyncpa [#allocation4], 0 }
   0x4   :  { %20 = vsyncpa [#allocation6], 0 }
   0x5   :  { %21 = vsyncpa [#allocation9], 0 }
   0x6   :  { %22 = vsyncpa [#allocation12], 0  ;;  %s1735_s23 = smov [#allocation5]   ;;  %s1736_s25 = smov [#allocation8]  }
   0x7   :  { %s45_s24 = sshll.u32 %s1735_s23, 4  ;;  %s67_s26 = sshll.u32 %s1736_s25, 4  ;;  %s46_s24 = int_to_ptr.vmem [resolvable:$true] %s45_s24  ;;  %s68_s26 = int_to_ptr.vmem [resolvable:$true] %s67_s26 }
   0x8   :  { %s1595_s27 = scalar_lea.vmem %s46_s24, 256  ;;  %p1600_p1 = scmp.lt.s32.totalorder %s46_s24, %s46_s24 }
   0x9   :  { %p1596_p0 = scmp.ne.s32.totalorder %s46_s24, %s1595_s27  ;;  %p1601_p2 = scmp.lt.s32.totalorder %s1595_s27, %s1595_s27 }
   0xb   :  { %p1602_p3 = por %p1601_p2, %p1600_p1 }
   0xd   :  { %p1603_p4 = pnand %p1602_p3, %p1596_p0 }
   0xf   :  { %1606 = shalt.err (!%p1603_p4)
}
  0x10   :  { %48 = dma.hbm_to_vmem [thread:$0]  %s1956_s3, 256, %s46_s24, [#allocation6]  }
  0x11   :  { %s1615_s29 = scalar_lea.vmem %s68_s26, 32  ;;  %p1620_p6 = scmp.lt.s32.totalorder %s68_s26, %s68_s26 }
  0x12   :  { %p1616_p5 = scmp.ne.s32.totalorder %s68_s26, %s1615_s29  ;;  %p1621_p7 = scmp.lt.s32.totalorder %s1615_s29, %s1615_s29 }
  0x14   :  { %p1622_p8 = por %p1621_p7, %p1620_p6 }
  0x16   :  { %p1623_p9 = pnand %p1622_p8, %p1616_p5 }
  0x18   :  { %1626 = shalt.err (!%p1623_p9)
}
  0x19   :  { %70 = dma.hbm_to_vmem [thread:$0]  %s1958_s5, 32, %s68_s26, [#allocation9]  }
  0x1a   :  { %s1737_s14 = smov [#allocation11]   ;;  %s1738_s16 = smov [#allocation3]  }
  0x1b   :  { %s91_s15 = sshll.u32 %s1737_s14, 4  ;;  %s32_s17 = sshll.u32 %s1738_s16, 4  ;;  %s92_s15 = int_to_ptr.vmem [resolvable:$true] %s91_s15  ;;  %s33_s17 = int_to_ptr.vmem [resolvable:$true] %s32_s17 }
  0x1c   :  { %s1635_s18 = scalar_lea.vmem %s92_s15, 16  ;;  %s1639_s3 = scalar_lea.vmem %s92_s15, 32 }
  0x1d   :  { %p1636_p10 = scmp.ne.s32.totalorder %s92_s15, %s1635_s18  ;;  %p1640_p11 = scmp.lt.s32.totalorder %s92_s15, %s92_s15 }
  0x1e   :  { %p1641_p12 = scmp.lt.s32.totalorder %s1639_s3, %s1635_s18 }
  0x20   :  { %p1642_p13 = por %p1641_p12, %p1640_p11 }
  0x22   :  { %p1643_p0 = pnand %p1642_p13, %p1636_p10 }
  0x24   :  { %1646 = shalt.err (!%p1643_p0)
}
  0x25   :  { %94 = dma.hbm_to_vmem [thread:$0]  %s1962_s9, 16, %s92_s15, [#allocation12]  }
  0x26   :  { %s1655_s21 = scalar_lea.vmem %s33_s17, 5248  ;;  %p1660_p2 = scmp.lt.s32.totalorder %s33_s17, %s33_s17 }
  0x27   :  { %p1656_p1 = scmp.ne.s32.totalorder %s33_s17, %s1655_s21  ;;  %p1661_p3 = scmp.lt.s32.totalorder %s1655_s21, %s1655_s21 }
  0x29   :  { %p1662_p4 = por %p1661_p3, %p1660_p2 }
  0x2b   :  { %p1663_p5 = pnand %p1662_p4, %p1656_p1 }
  0x2d   :  { %1666 = shalt.err (!%p1663_p5)
}
  0x2e   :  { %s1739_s5 = smov 128   ;;  %s1740_s22 = smov 8  }
  0x2f   :  { %38 = dma.hbm_to_vmem [thread:$0]  %s1955_s2, 5248, %s33_s17, [#allocation4], %s1739_s5, %s1739_s5, %s1740_s22  }
  0x30   :  { %s1741_s25 = smov [#allocation7]   ;;  %s1742_s27 = smov [#allocation10]  }
  0x31   :  { %s54_s26 = sshll.u32 %s1741_s25, 4  ;;  %s79_s28 = sshll.u32 %s1742_s27, 4  ;;  %s55_s26 = int_to_ptr.vmem [resolvable:$true] %s54_s26  ;;  %s80_s28 = int_to_ptr.vmem [resolvable:$true] %s79_s28 }
  0x32   :  { %s1675_s9 = scalar_lea.vmem %s55_s26, 4096  ;;  %p1680_p7 = scmp.lt.s32.totalorder %s55_s26, %s55_s26 }
  0x33   :  { %p1676_p6 = scmp.ne.s32.totalorder %s55_s26, %s1675_s9  ;;  %p1681_p8 = scmp.lt.s32.totalorder %s1675_s9, %s1675_s9 }
  0x35   :  { %p1682_p9 = por %p1681_p8, %p1680_p7 }
  0x37   :  { %p1683_p10 = pnand %p1682_p9, %p1676_p6 }
  0x39   :  { %1686 = shalt.err (!%p1683_p10)
}
  0x3a   :  { %60 = dma.hbm_to_vmem [thread:$0]  %s1957_s4, 4096, %s55_s26, [#allocation6], %s1739_s5, %s1739_s5, %s1740_s22  }
  0x3b   :  { %s1695_s30 = scalar_lea.vmem %s80_s28, 16  ;;  %s1699_s2 = scalar_lea.vmem %s80_s28, 32 }
  0x3c   :  { %p1696_p11 = scmp.ne.s32.totalorder %s80_s28, %s1695_s30  ;;  %p1700_p12 = scmp.lt.s32.totalorder %s80_s28, %s80_s28 }
  0x3d   :  { %p1701_p13 = scmp.lt.s32.totalorder %s1699_s2, %s1695_s30 }
  0x3f   :  { %p1702_p0 = por %p1701_p13, %p1700_p12 }
  0x41   :  { %p1703_p1 = pnand %p1702_p0, %p1696_p11 }
  0x43   :  { %1706 = shalt.err (!%p1703_p1)
}
  0x44   :  { %82 = dma.hbm_to_vmem [thread:$0]  %s1960_s7, 16, %s80_s28, [#allocation9]  }
  0x45   :  { %s1743_s15 = smov [#allocation13]  }
  0x46   :  { %s101_s16 = sshll.u32 %s1743_s15, 4  ;;  %s102_s16 = int_to_ptr.vmem [resolvable:$true] %s101_s16 }
  0x47   :  { %s1715_s17 = scalar_lea.vmem %s102_s16, 16  ;;  %s1719_s18 = scalar_lea.vmem %s102_s16, 32 }
  0x48   :  { %p1716_p2 = scmp.ne.s32.totalorder %s102_s16, %s1715_s17  ;;  %p1720_p3 = scmp.lt.s32.totalorder %s102_s16, %s102_s16 }
  0x49   :  { %p1721_p4 = scmp.lt.s32.totalorder %s1719_s18, %s1715_s17 }
  0x4b   :  { %p1722_p5 = por %p1721_p4, %p1720_p3 }
  0x4d   :  { %p1723_p6 = pnand %p1722_p5, %p1716_p2 }
  0x4f   :  { %1726 = shalt.err (!%p1723_p6)
}
  0x50   :  { %104 = dma.hbm_to_vmem [thread:$0]  %s1963_s10, 16, %s102_s16, [#allocation12]  }
  0x51   :  { %1727 = dma.done.wait [#allocation4], 5248  }
  0x52   :  { %1728 = vsyncadd [#allocation4], 4294962048 }
  0x53   :  { %1729 = dma.done.wait [#allocation6], 4352  }
  0x54   :  { %1730 = vsyncadd [#allocation6], 4294962944 }
  0x55   :  { %1731 = dma.done.wait [#allocation9], 48  }
  0x56   :  { %1732 = vsyncadd [#allocation9], 4294967248 }
  0x57   :  { %1733 = dma.done.wait [#allocation12], 32  }
  0x58   :  { %1734 = vsyncadd [#allocation12], 4294967264  ;;  %v1744_v1 = vmov 0   ;;  %v129_v2 = vld [vmem:[%s1953_s0] sm:$0xff]  ;;  %v1431_v7 = vld [vmem:[#allocation3 + $0x70] ss:$8 sps:$4 sm:$0xff]   ;;  %v133_v57 = vlaneseq }
  0x59   :  { %1423 = vset.pattern.permute.xlu0 %v1744_v1  ;;  %1425 = vset.pattern.permute.xlu1 %v1744_v1  ;;  %v130_v3 = vld [vmem:[%s1954_s1] sm:$0xff]  ;;  %v1404_v4 = vtrunc.f32 %v129_v2  ;;  %v1437_v16 = vld [vmem:[#allocation3 + $0x50] ss:$8 sps:$4 sm:$0xff]   ;;  %v1745_v17 = vmov 1   ;;  %vm451_vm0 = vcmask 1043456   ;;  %v1746_v32 = vmov 2  }
  0x5a   :  { %531 = vmatprep.mubr.bf16.mxu1 %v1744_v1  ;;  %v1406_v5 = vtrunc.f32 %v130_v3  ;;  %v1429_v6 = vld [vmem:[#allocation3 + $0x74] ss:$8 sps:$4 sm:$0xff]   ;;  %v1432_v8 = vld [vmem:[#allocation3 + $0x64] ss:$8 sps:$4 sm:$0xff]   ;;  %v1434_v11 = vld [vmem:[#allocation3 + $0x60] ss:$8 sps:$4 sm:$0xff]  }
  0x5b   :  { %v1405_v9 = vcvt.f32.s32 %v1404_v4  ;;  %458 = vmatprep.subr.bf16.mxu0 %v1429_v6  ;;  %v1435_v13 = vld [vmem:[#allocation3 + $0x54] ss:$8 sps:$4 sm:$0xff]   ;;  %v1438_v18 = vld [vmem:[#allocation3 + $0x44] ss:$8 sps:$4 sm:$0xff]   ;;  %v1440_v19 = vld [vmem:[#allocation3 + $0x40] ss:$8 sps:$4 sm:$0xff]  }
  0x5c   :  { %v1407_v10 = vcvt.f32.s32 %v1406_v5  ;;  %459 = vmatpush1.bf16.msra.mxu0 %v1431_v7  ;;  %v1441_v20 = vld [vmem:[#allocation3 + $0x34] ss:$8 sps:$4 sm:$0xff]   ;;  %v1443_v21 = vld [vmem:[#allocation3 + $0x30] ss:$8 sps:$4 sm:$0xff]   ;;  %v1444_v22 = vld [vmem:[#allocation3 + $0x24] ss:$8 sps:$4 sm:$0xff]  }
  0x5d   :  { %138 = vperm.xlu0 %1423, %v1405_v9   ;;  %460 = vmatprep.subr.bf16.mxu0 %v1432_v8  ;;  %v143_v14 = vadd.s32 104, %v1405_v9  ;;  %v222_v23 = vld [vmem:[#allocation3 + $0x140] sm:$0xff]  ;;  %v1470_v27 = vld [vmem:[#allocation3 + $0x134] ss:$8 sps:$4 sm:$0xff]   ;;  %v1472_v30 = vld [vmem:[#allocation3 + $0x130] ss:$8 sps:$4 sm:$0xff]  }
  0x5e   :  { %v153_v12 = vadd.s32 112, %v1407_v10  ;;  %v163_v15 = vadd.s32 312, %v1407_v10  ;;  %v1282_v24 = vcombine.high %v222_v23, %v222_v23  ;;  %v1281_v25 = vcombine.low %v222_v23, %v222_v23  ;;  %v1446_v26 = vld [vmem:[#allocation3 + $0x20] ss:$8 sps:$4 sm:$0xff]   ;;  %v1447_v28 = vld [vmem:[#allocation3 + $0x14] ss:$8 sps:$4 sm:$0xff]  }
  0x5f   :  { %v1476_v31 = vld [vmem:[#allocation3 + $0x124] ss:$8 sps:$4 sm:$0xff]   ;;  %v1449_v33 = vld [vmem:[#allocation3 + $0x10] ss:$8 sps:$4 sm:$0xff]   ;;  %v1478_v35 = vld [vmem:[#allocation3 + $0x120] ss:$8 sps:$4 sm:$0xff]  }
  0x60   :  { %155 = vperm.xlu1 %1425, %v153_v12   ;;  %461 = vmatpush1.bf16.msra.mxu0 %v1434_v11  ;;  %v453_v29 = vsel %vm451_vm0, %v1281_v25, 0  ;;  %v1450_v34 = vld [vmem:[#allocation3 + $0x4] ss:$8 sps:$4 sm:$0xff]   ;;  %v1452_v36 = vld [vmem:[#allocation3] ss:$8 sps:$4 sm:$0xff]   ;;  %v134_v58 = vand.u32 127, %v133_v57 }
  0x61   :  { %1424 = vset.pattern.permute.xlu0 %v1745_v17  ;;  %462 = vmatprep.subr.bf16.mxu0 %v1435_v13  ;;  %v1482_v37 = vld [vmem:[#allocation3 + $0x114] ss:$8 sps:$4 sm:$0xff]   ;;  %v1484_v39 = vld [vmem:[#allocation3 + $0x110] ss:$8 sps:$4 sm:$0xff]   ;;  %v1488_v40 = vld [vmem:[#allocation3 + $0x104] ss:$8 sps:$4 sm:$0xff]  }
  0x62   :  { %145 = vperm.xlu0 %1424, %v143_v14   ;;  %1287 = vmatprep.subr.msk.bf16.mxu1 %vm451_vm0, %v1282_v24  ;;  %v1453_v38 = vld [vmem:[#allocation3 + $0xf4] ss:$8 sps:$4 sm:$0xff]   ;;  %v1455_v41 = vld [vmem:[#allocation3 + $0xf0] ss:$8 sps:$4 sm:$0xff]   ;;  %v1456_v42 = vld [vmem:[#allocation3 + $0xe4] ss:$8 sps:$4 sm:$0xff]  }
  0x63   :  { %506 = vmatpush1.bf16.msra.mxu1 %v453_v29  ;;  %v1490_v43 = vld [vmem:[#allocation3 + $0x100] ss:$8 sps:$4 sm:$0xff]   ;;  %v1459_v45 = vld [vmem:[#allocation3 + $0xd4] ss:$8 sps:$4 sm:$0xff]   ;;  %v1461_v46 = vld [vmem:[#allocation3 + $0xd0] ss:$8 sps:$4 sm:$0xff]  }
  0x64   :  { %1426 = vset.pattern.permute.xlu1 %v1745_v17  ;;  %463 = vmatpush1.bf16.msra.mxu0 %v1437_v16  ;;  %v1458_v44 = vld [vmem:[#allocation3 + $0xe0] ss:$8 sps:$4 sm:$0xff]   ;;  %v1462_v47 = vld [vmem:[#allocation3 + $0xc4] ss:$8 sps:$4 sm:$0xff]   ;;  %v1467_v49 = vld [vmem:[#allocation3 + $0xb4] ss:$8 sps:$4 sm:$0xff]  }
  0x65   :  { %165 = vperm.xlu1 %1426, %v163_v15   ;;  %464 = vmatprep.subr.bf16.mxu0 %v1438_v18  ;;  %v1464_v48 = vld [vmem:[#allocation3 + $0xc0] ss:$8 sps:$4 sm:$0xff]   ;;  %v1469_v50 = vld [vmem:[#allocation3 + $0xb0] ss:$8 sps:$4 sm:$0xff]   ;;  %v1473_v51 = vld [vmem:[#allocation3 + $0xa4] ss:$8 sps:$4 sm:$0xff]  }
  0x66   :  { %507 = vmatprep.subr.bf16.mxu1 %v1470_v27  ;;  %1428 = vset.pattern.permute.xlu0 %v1746_v32  ;;  %v1475_v52 = vld [vmem:[#allocation3 + $0xa0] ss:$8 sps:$4 sm:$0xff]   ;;  %v1479_v53 = vld [vmem:[#allocation3 + $0x94] ss:$8 sps:$4 sm:$0xff]   ;;  %v1481_v54 = vld [vmem:[#allocation3 + $0x90] ss:$8 sps:$4 sm:$0xff]  }
  0x67   :  { %544 = vperm.xlu0 %1428, %v130_v3   ;;  %508 = vmatpush1.bf16.msra.mxu1 %v1472_v30  ;;  %v1485_v55 = vld [vmem:[#allocation3 + $0x84] ss:$8 sps:$4 sm:$0xff]   ;;  %v1487_v56 = vld [vmem:[#allocation3 + $0x80] ss:$8 sps:$4 sm:$0xff]   ;;  %v136_v61 = vadd.s32 256, %v134_v58  ;;  %v135_v63 = vadd.s32 128, %v134_v58 }
  0x68   :  { %465 = vmatpush1.bf16.msra.mxu0 %v1440_v19  ;;  %509 = vmatprep.subr.bf16.mxu1 %v1476_v31  ;;  %v1966_v0 = vmov 0  ;;  %vm447_vm0 = vcmask 588800   ;;  %v1748_v5 = vmov 1.0|1.0   ;;  %v1491_v6 = vld [vmem:[#allocation7 + $0x70] ss:$8 sps:$4 sm:$0xff]  }
  0x69   :  { %466 = vmatprep.subr.bf16.mxu0 %v1441_v20  ;;  %1427 = vset.pattern.permute.xlu1 %v1746_v32  ;;  %v1493_v7 = vld [vmem:[#allocation7 + $0x74] ss:$8 sps:$4 sm:$0xff]   ;;  %v1496_v8 = vld [vmem:[#allocation7 + $0x64] ss:$8 sps:$4 sm:$0xff]   ;;  %v1494_v9 = vld [vmem:[#allocation7 + $0x60] ss:$8 sps:$4 sm:$0xff]  }
  0x6a   :  { %226 = vperm.xlu1 %1427, %v129_v2   ;;  %v1747_v2 = vmov 0.0   ;;  %v1499_v10 = vld [vmem:[#allocation7 + $0x54] ss:$8 sps:$4 sm:$0xff]   ;;  %v1497_v11 = vld [vmem:[#allocation7 + $0x50] ss:$8 sps:$4 sm:$0xff]  }
  0x6b   :  { %510 = vmatpush1.bf16.msra.mxu1 %v1478_v35  ;;  %v1502_v12 = vld [vmem:[#allocation7 + $0x44] ss:$8 sps:$4 sm:$0xff]   ;;  %v1500_v13 = vld [vmem:[#allocation7 + $0x40] ss:$8 sps:$4 sm:$0xff]   ;;  %v1505_v14 = vld [vmem:[#allocation7 + $0x34] ss:$8 sps:$4 sm:$0xff]  }
  0x6c   :  { %467 = vmatpush1.bf16.msra.mxu0 %v1443_v21  ;;  %511 = vmatprep.subr.bf16.mxu1 %v1482_v37  ;;  %v1503_v15 = vld [vmem:[#allocation7 + $0x30] ss:$8 sps:$4 sm:$0xff]   ;;  %v1508_v16 = vld [vmem:[#allocation7 + $0x24] ss:$8 sps:$4 sm:$0xff]   ;;  %v1506_v17 = vld [vmem:[#allocation7 + $0x20] ss:$8 sps:$4 sm:$0xff]  }
  0x6d   :  { %468 = vmatprep.subr.bf16.mxu0 %v1444_v22  ;;  %v1511_v18 = vld [vmem:[#allocation7 + $0x14] ss:$8 sps:$4 sm:$0xff]   ;;  %v1509_v19 = vld [vmem:[#allocation7 + $0x10] ss:$8 sps:$4 sm:$0xff]   ;;  %v1514_v20 = vld [vmem:[#allocation7 + $0x4] ss:$8 sps:$4 sm:$0xff]  }
  0x6e   :  { %v1512_v21 = vld [vmem:[#allocation7] ss:$8 sps:$4 sm:$0xff]   ;;  %v1517_v22 = vld [vmem:[#allocation7 + $0xf4] ss:$8 sps:$4 sm:$0xff]   ;;  %v1515_v23 = vld [vmem:[#allocation7 + $0xf0] ss:$8 sps:$4 sm:$0xff]  }
  0x6f   :  { %512 = vmatpush1.bf16.msra.mxu1 %v1484_v39  ;;  %v1520_v24 = vld [vmem:[#allocation7 + $0xe4] ss:$8 sps:$4 sm:$0xff]   ;;  %v1518_v25 = vld [vmem:[#allocation7 + $0xe0] ss:$8 sps:$4 sm:$0xff]  }
  0x70   :  { %469 = vmatpush1.bf16.msra.mxu0 %v1446_v26  ;;  %513 = vmatprep.subr.bf16.mxu1 %v1488_v40  ;;  %v231_v26 = vshrl.u32 %v133_v57, 7  ;;  %v541_v32 = vld [vmem:[#allocation5 + $0x1] ss:$8 sm:$0x3] }
  0x71   :  { %470 = vmatprep.subr.bf16.mxu0 %v1447_v28  ;;  %v223_v28 = vld [vmem:[#allocation5] ss:$8 sm:$0x3] }
  0x72   :  { %v1854_v27 = vsub.s32 0, %v231_v26  ;;  %v1856_v29 = vsub.s32 1, %v231_v26 }
  0x73   :  { %514 = vmatpush1.bf16.msra.mxu1 %v1490_v43 }
  0x74   :  { %471 = vmatpush1.bf16.msra.mxu0 %v1449_v33  ;;  %802 = vmatprep.subr.bf16.mxu1 %v1493_v7  ;;  %v233_v30 = vrot.slane %v223_v28, %v1854_v27  ;;  %v237_v33 = vrot.slane %v223_v28, %v1856_v29  ;;  %v555_v40 = vrot.slane %v541_v32, %v1856_v29  ;;  %v1532_v7 = vld [vmem:[#allocation7 + $0xa4] ss:$8 sps:$4 sm:$0xff]  }
  0x75   :  { %472 = vmatprep.subr.bf16.mxu0 %v1450_v34  ;;  %v1539_v28 = vld [vmem:[%s1959_s6 + $0x78] sm:$0xff]  }
  0x78   :  { %473 = vmatpush1.bf16.msra.mxu0 %v1452_v36  ;;  %v551_v36 = vrot.slane %v541_v32, %v1854_v27  ;;  %v630_v32 = vld [vmem:[#allocation8] sm:$0x3] }
  0x79   :  { %474 = vmatprep.subr.bf16.mxu0 %v1453_v38 }
  0x7c   :  { %475 = vmatpush2.bf16.msra.mxu0 %v1455_v41 }
  0x7d   :  { %476 = vmatprep.subr.bf16.mxu0 %v1456_v42  ;;  %v563_v42 = vld [vmem:[#allocation5 + $0x2] ss:$8 sm:$0x3] }
  0x80   :  { %477 = vmatpush2.bf16.msra.mxu0 %v1458_v44 }
  0x81   :  { %478 = vmatprep.subr.bf16.mxu0 %v1459_v45 }
  0x84   :  { %479 = vmatpush2.bf16.msra.mxu0 %v1461_v46 }
  0x85   :  { %480 = vmatprep.subr.bf16.mxu0 %v1462_v47 }
  0x88   :  { %481 = vmatpush2.bf16.msra.mxu0 %v1464_v48 }
  0x89   :  { %482 = vmatprep.subr.bf16.mxu0 %v1467_v49 }
  0x8c   :  { %483 = vmatpush2.bf16.msra.mxu0 %v1469_v50  ;;  %v568_v50 = vrot.slane %v563_v42, %v1854_v27 }
  0x8d   :  { %484 = vmatprep.subr.bf16.mxu0 %v1473_v51 }
  0x90   :  { %485 = vmatpush2.bf16.msra.mxu0 %v1475_v52 }
  0x91   :  { %486 = vmatprep.subr.bf16.mxu0 %v1479_v53 }
  0x94   :  { %487 = vmatpush2.bf16.msra.mxu0 %v1481_v54 }
  0x95   :  { %488 = vmatprep.subr.bf16.mxu0 %v1485_v55  ;;  %v572_v55 = vrot.slane %v563_v42, %v1856_v29 }
  0x98   :  { %489 = vmatpush2.bf16.msra.mxu0 %v1487_v56 }
  0x99   :  { %1353 = vmatprep.subr.bf16.mxu0 %v1539_v28 }
  0xd8   :  { %v139_v59 = vpop.permute.xlu0 %138 }
  0xd9   :  { %vm140_vm1 = vcmp.eq.s32.totalorder %v134_v58, %v139_v59  ;;  %vm142_vm4 = vcmp.eq.s32.totalorder %v136_v61, %v139_v59  ;;  %vm141_vm11 = vcmp.eq.s32.totalorder %v135_v63, %v139_v59 }
  0xdb   :  { %v156_v60 = vpop.permute.xlu1 %155 }
  0xdc   :  { %vm159_vm6 = vcmp.eq.s32.totalorder %v136_v61, %v156_v60  ;;  %vm158_vm15 = vcmp.eq.s32.totalorder %v135_v63, %v156_v60 }
  0xdd   :  { %v146_v62 = vpop.permute.xlu0 %145 }
  0xde   :  { %vm147_vm2 = vcmp.eq.s32.totalorder %v134_v58, %v146_v62  ;;  %vm149_vm3 = vcmp.eq.s32.totalorder %v136_v61, %v146_v62  ;;  %vm148_vm7 = vcmp.eq.s32.totalorder %v135_v63, %v146_v62 }
  0xdf   :  { %vm1846_vm5 = vmor %vm140_vm1, %vm147_vm2 }
  0xe0   :  { %v1967_v0 = vsel %vm1846_vm5, 4294967295, %v1966_v0  ;;  %v166_v1 = vpop.permute.xlu1 %165  ;;  %vm152_vm8 = vmor %vm142_vm4, %vm149_vm3  ;;  %vm157_vm3 = vcmp.eq.s32.totalorder %v134_v58, %v156_v60 }
  0xe1   :  { %vm169_vm9 = vcmp.eq.s32.totalorder %v136_v61, %v166_v1  ;;  %vm162_vm10 = vmor %vm152_vm8, %vm159_vm6  ;;  %vm168_vm13 = vcmp.eq.s32.totalorder %v135_v63, %v166_v1  ;;  %vm167_vm2 = vcmp.eq.s32.totalorder %v134_v58, %v166_v1  ;;  %vm1968_vm6 = vnez %v1967_v0  ;;  %v1523_v0 = vld [vmem:[#allocation7 + $0xd4] ss:$8 sps:$4 sm:$0xff]   ;;  %v1521_v1 = vld [vmem:[#allocation7 + $0xd0] ss:$8 sps:$4 sm:$0xff]  }
  0xe2   :  { %vm172_vm12 = vmor %vm162_vm10, %vm169_vm9  ;;  %v545_v37 = vpop.permute.xlu0 %544 }
  0xe3   :  { %v1240_v3 = vsel %vm172_vm12, 1.0, %v1747_v2  ;;  %vm151_vm14 = vmor %vm141_vm11, %vm148_vm7  ;;  %v558_v45 = vmul.f32 %v551_v36, %v545_v37  ;;  %v559_v51 = vmul.f32 %v555_v40, %v545_v37  ;;  %vm1192_vm7 = vcmask 523264  }
  0xe4   :  { %v181_v4 = vpack.c.bf16 %v1240_v3, %v1240_v3  ;;  %vm161_vm1 = vmor %vm151_vm14, %vm158_vm15  ;;  %v1526_v3 = vld [vmem:[#allocation7 + $0xc4] ss:$8 sps:$4 sm:$0xff]   ;;  %vm1228_vm11 = vcmask 7168  }
  0xe5   :  { %vm171_vm5 = vmor %vm161_vm1, %vm168_vm13  ;;  %v227_v31 = vpop.permute.xlu1 %226 }
  0xe6   :  { %vm1283_vm4 = vmpackc.low %vm171_vm5, %vm171_vm5  ;;  %1288 = vmatmul.mubr.msk.bf16.vlgmr.msra.gmra.mxu1 %vm447_vm0, %v181_v4  ;;  %v240_v35 = vmul.f32 %v233_v30, %v227_v31  ;;  %v241_v39 = vmul.f32 %v237_v33, %v227_v31  ;;  %v1524_v4 = vld [vmem:[#allocation7 + $0xc0] ss:$8 sps:$4 sm:$0xff]   ;;  %v1541_v31 = vld [vmem:[%s1959_s6 + $0x70] sm:$0xff]   ;;  %v635_v33 = vrot.slane %v630_v32, %v1854_v27  ;;  %vm1749_vm5 = vmmov 0  }
  0xe7   :  { %1284 = vmatprep.mubr.msk.bf16.mxu0 %vm1283_vm4, %v1748_v5  ;;  %vm160_vm8 = vmor %vm1968_vm6, %vm157_vm3  ;;  %803 = vmatpush1.bf16.msra.mxu1 %v1491_v6  ;;  %v1527_v6 = vld [vmem:[#allocation7 + $0xb0] ss:$8 sps:$4 sm:$0xff]   ;;  %v1540_v30 = vld [vmem:[%s1959_s6 + $0x38] sm:$0xff]  }
  0xe8   :  { %vm170_vm9 = vmor %vm160_vm8, %vm167_vm2  ;;  %804 = vmatprep.subr.bf16.mxu1 %v1496_v8  ;;  %v1530_v8 = vld [vmem:[#allocation7 + $0xa0] ss:$8 sps:$4 sm:$0xff]  }
  0xe9   :  { %vm1285_vm10 = vmpackc.low %vm170_vm9, %vm170_vm9 }
  0xea   :  { %1286 = vmatmul.mubr.msk.bf16.vlgmr.msra.gmra.mxu0 %vm1285_vm10, %v1748_v5  ;;  %v1529_v5 = vld [vmem:[#allocation7 + $0xb4] ss:$8 sps:$4 sm:$0xff]  }
  0xeb   :  { %805 = vmatpush1.bf16.msra.mxu1 %v1494_v9  ;;  %v1535_v9 = vld [vmem:[#allocation7 + $0x94] ss:$8 sps:$4 sm:$0xff]   ;;  %1354 = vmatpush3.bf16.msra.mxu0 %v1540_v30 }
  0xec   :  { %806 = vmatprep.subr.bf16.mxu1 %v1499_v10  ;;  %v1533_v10 = vld [vmem:[#allocation7 + $0x90] ss:$8 sps:$4 sm:$0xff]   ;;  %1355 = vmatprep.subr.bf16.mxu0 %v1541_v31 }
  0xef   :  { %807 = vmatpush1.bf16.msra.mxu1 %v1497_v11  ;;  %v1538_v11 = vld [vmem:[#allocation7 + $0x84] ss:$8 sps:$4 sm:$0xff]  }
  0xf0   :  { %808 = vmatprep.subr.bf16.mxu1 %v1502_v12  ;;  %v1536_v12 = vld [vmem:[#allocation7 + $0x80] ss:$8 sps:$4 sm:$0xff]  }
  0xf3   :  { %809 = vmatpush1.bf16.msra.mxu1 %v1500_v13 }
  0xf4   :  { %810 = vmatprep.subr.bf16.mxu1 %v1505_v14 }
  0xf7   :  { %811 = vmatpush1.bf16.msra.mxu1 %v1503_v15 }
  0xf8   :  { %812 = vmatprep.subr.bf16.mxu1 %v1508_v16 }
  0xfb   :  { %813 = vmatpush1.bf16.msra.mxu1 %v1506_v17 }
  0xfc   :  { %814 = vmatprep.subr.bf16.mxu1 %v1511_v18 }
  0xff   :  { %815 = vmatpush1.bf16.msra.mxu1 %v1509_v19 }
 0x100   :  { %816 = vmatprep.subr.bf16.mxu1 %v1514_v20 }
 0x103   :  { %817 = vmatpush1.bf16.msra.mxu1 %v1512_v21 }
 0x104   :  { %818 = vmatprep.subr.bf16.mxu1 %v1517_v22 }
 0x107   :  { %819 = vmatpush2.bf16.msra.mxu1 %v1515_v23 }
 0x108   :  { %820 = vmatprep.subr.bf16.mxu1 %v1520_v24 }
 0x10b   :  { %821 = vmatpush2.bf16.msra.mxu1 %v1518_v25 }
 0x10c   :  { %822 = vmatprep.subr.bf16.mxu1 %v1523_v0  ;;  %v1553_v0 = vld [vmem:[%s1959_s6 + $0x40] sm:$0xff]  }
 0x10f   :  { %823 = vmatpush2.bf16.msra.mxu1 %v1521_v1  ;;  %v1554_v1 = vld [vmem:[%s1959_s6] sm:$0xff]  }
 0x110   :  { %824 = vmatprep.subr.bf16.mxu1 %v1526_v3 }
 0x113   :  { %825 = vmatpush2.bf16.msra.mxu1 %v1524_v4 }
 0x114   :  { %826 = vmatprep.subr.bf16.mxu1 %v1529_v5 }
 0x117   :  { %827 = vmatpush2.bf16.msra.mxu1 %v1527_v6 }
 0x118   :  { %828 = vmatprep.subr.bf16.mxu1 %v1532_v7 }
 0x11b   :  { %829 = vmatpush2.bf16.msra.mxu1 %v1530_v8 }
 0x11c   :  { %830 = vmatprep.subr.bf16.mxu1 %v1535_v9 }
 0x11f   :  { %831 = vmatpush2.bf16.msra.mxu1 %v1533_v10 }
 0x120   :  { %832 = vmatprep.subr.bf16.mxu1 %v1538_v11 }
 0x123   :  { %833 = vmatpush2.bf16.msra.mxu1 %v1536_v12 }
 0x124   :  { %1384 = vmatprep.subr.bf16.mxu1 %v1747_v2 }
 0x1a6   :  { %v533_v34 = vpop.f32.mrf.mxu1 }
 0x1a8   :  { %v535_v38 = vpop.f32.mrf.mxu1 }
 0x1aa   :  { %v492_v41 = vpop.f32.mrf.mxu0  ;;  %v537_v43 = vpop.f32.mrf.mxu1 }
 0x1ab   :  { %v493_v44 = vadd.f32 %v492_v41, %v240_v35 }
 0x1ac   :  { %v494_v46 = vpop.f32.mrf.mxu0  ;;  %v538_v47 = vpop.f32.mrf.mxu1 }
 0x1ad   :  { %v534_v48 = vadd.f32 %v533_v34, %v493_v44  ;;  %v495_v49 = vadd.f32 %v494_v46, %v241_v39  ;;  %v639_v34 = vrot.slane %v630_v32, %v1856_v29 }
 0x1ae   :  { %v496_v52 = vpop.f32.mrf.mxu0 }
 0x1af   :  { %v560_v53 = vadd.f32 %v558_v45, %v534_v48  ;;  %v536_v54 = vadd.f32 %v535_v38, %v495_v49 }
 0x1b0   :  { %v497_v56 = vpop.f32.mrf.mxu0 }
 0x1b1   :  { %v575_v57 = vadd.f32 %v568_v50, %v560_v53  ;;  %v561_v58 = vadd.f32 %v559_v51, %v536_v54  ;;  %v1542_v53 = vld [vmem:[%s1959_s6 + $0x30] sm:$0xff]   ;;  %v1543_v54 = vld [vmem:[%s1959_s6 + $0x68] sm:$0xff]   ;;  %v1545_v56 = vld [vmem:[%s1959_s6 + $0x60] sm:$0xff]  }
 0x1b2   :  { %1356 = vmatpush3.bf16.msra.mxu0 %v1542_v53 }
 0x1b3   :  { %v576_v59 = vadd.f32 %v572_v55, %v561_v58  ;;  %v582_v61 = vmul.f32 %v575_v57, %v575_v57  ;;  %v1544_v55 = vld [vmem:[%s1959_s6 + $0x28] sm:$0xff]   ;;  %1357 = vmatprep.subr.bf16.mxu0 %v1543_v54  ;;  %v1547_v58 = vld [vmem:[%s1959_s6 + $0x58] sm:$0xff]  }
 0x1b5   :  { %v577_v60 = vadd.f32 %v576_v59, %v575_v57  ;;  %v583_v62 = vmul.f32 %v576_v59, %v576_v59 }
 0x1b6   :  { %1358 = vmatpush3.bf16.msra.mxu0 %v1544_v55 }
 0x1b7   :  { %578 = vadd.xlane.f32.xlu1 %v577_v60  ;;  %v584_v63 = vadd.f32 %v583_v62, %v582_v61  ;;  %1359 = vmatprep.subr.bf16.mxu0 %v1545_v56  ;;  %v1549_v60 = vld [vmem:[%s1959_s6 + $0x50] sm:$0xff]   ;;  %v1551_v62 = vld [vmem:[%s1959_s6 + $0x48] sm:$0xff]  }
 0x1b8   :  { %v1550_v61 = vld [vmem:[%s1959_s6 + $0x10] sm:$0xff]  }
 0x1b9   :  { %585 = vadd.xlane.f32.xlu0 %v584_v63  ;;  %v1552_v63 = vld [vmem:[%s1959_s6 + $0x8] sm:$0xff]  }
 0x240   :  { %v579_v13 = vpop.xlane.xlu1 %578 }
 0x241   :  { %v581_v14 = vmul.f32 0.00390625, %v579_v13 }
 0x242   :  { %v586_v15 = vpop.xlane.xlu0 %585 }
 0x243   :  { %v587_v16 = vmul.f32 0.00390625, %v586_v15  ;;  %v588_v17 = vmul.f32 %v581_v14, %v581_v14  ;;  %v590_v20 = vsub.f32 %v575_v57, %v581_v14  ;;  %v591_v21 = vsub.f32 %v576_v59, %v581_v14  ;;  %v1546_v57 = vld [vmem:[%s1959_s6 + $0x20] sm:$0xff]   ;;  %v1548_v59 = vld [vmem:[%s1959_s6 + $0x18] sm:$0xff]  }
 0x244   :  { %1360 = vmatpush3.bf16.msra.mxu0 %v1546_v57 }
 0x245   :  { %v589_v18 = vsub.f32 %v587_v16, %v588_v17  ;;  %1361 = vmatprep.subr.bf16.mxu0 %v1547_v58  ;;  %v1555_v17 = vld [vmem:[%s1961_s8 + $0x38] sm:$0xff]  }
 0x247   :  { %v592_v19 = vadd.f32 1e-05, %v589_v18  ;;  %v1556_v18 = vld [vmem:[%s1961_s8 + $0x30] sm:$0xff]  }
 0x248   :  { %1362 = vmatpush3.bf16.msra.mxu0 %v1548_v59 }
 0x249   :  { %1563 = vrsqrt.f32 %v592_v19  ;;  %1363 = vmatprep.subr.bf16.mxu0 %v1549_v60 }
 0x24c   :  { %1364 = vmatpush3.bf16.msra.mxu0 %v1550_v61 }
 0x24d   :  { %1365 = vmatprep.subr.bf16.mxu0 %v1551_v62 }
 0x250   :  { %1366 = vmatpush3.bf16.msra.mxu0 %v1552_v63 }
 0x251   :  { %1367 = vmatprep.subr.bf16.mxu0 %v1553_v0 }
 0x254   :  { %1368 = vmatpush3.bf16.msra.mxu0 %v1554_v1 }
 0x256   :  { %v1564_v22 = vpop.eup %1563 }
 0x257   :  { %v595_v23 = vmul.f32 %v1564_v22, %v591_v21  ;;  %v594_v24 = vmul.f32 %v1564_v22, %v590_v20  ;;  %v1323_v20 = vld [vmem:[#allocation10] ss:$0 sm:$0xff] }
 0x259   :  { %v597_v25 = vpack.c.bf16 %v595_v23, %v595_v23  ;;  %v596_v26 = vpack.c.bf16 %v594_v24, %v594_v24 }
 0x25b   :  { %834 = vmatprep.mubr.bf16.mxu1 %v597_v25 }
 0x25c   :  { %835 = vmatmul.mubr.bf16.vlgmr.msra.gmra.mxu1 %v596_v26 }
 0x25d   :  { %1385 = vmatpush3.bf16.msra.mxu1 %v1555_v17  ;;  %1400 = vmatprep.mubr.msk.bf16.mxu1 %vm1749_vm5, %v1747_v2 }
 0x25e   :  { %1386 = vmatprep.subr.bf16.mxu1 %v1747_v2 }
 0x261   :  { %1387 = vmatpush3.bf16.msra.mxu1 %v1556_v18 }
 0x262   :  { %1388 = vmatprep.subr.bf16.mxu1 %v1747_v2 }
 0x31c   :  { %v836_v35 = vpop.f32.mrf.mxu1 }
 0x31d   :  { %v837_v36 = vadd.f32 %v836_v35, %v635_v33  ;;  %v1558_v35 = vld [vmem:[%s1961_s8 + $0x20] sm:$0xff]  }
 0x31e   :  { %v838_v37 = vpop.f32.mrf.mxu1 }
 0x31f   :  { %v1321_v38 = vmul.f32 -1.442695, %v837_v36  ;;  %v839_v39 = vadd.f32 %v838_v37, %v639_v34  ;;  %v1557_v34 = vld [vmem:[%s1961_s8 + $0x28] sm:$0xff]   ;;  %v1560_v37 = vld [vmem:[%s1961_s8 + $0x10] sm:$0xff]  }
 0x320   :  { %v840_v40 = vpop.f32.mrf.mxu1  ;;  %1389 = vmatpush3.bf16.msra.mxu1 %v1557_v34 }
 0x321   :  { %1565 = vpow2.f32 %v1321_v38  ;;  %v1322_v41 = vmul.f32 -1.442695, %v839_v39  ;;  %1390 = vmatprep.subr.bf16.mxu1 %v1747_v2  ;;  %v1561_v38 = vld [vmem:[%s1961_s8 + $0x8] sm:$0xff]  }
 0x322   :  { %v841_v42 = vpop.f32.mrf.mxu1 }
 0x323   :  { %1567 = vpow2.f32 %v1322_v41 }
 0x324   :  { %1391 = vmatpush3.bf16.msra.mxu1 %v1558_v35 }
 0x325   :  { %1392 = vmatprep.subr.bf16.mxu1 %v1747_v2 }
 0x32e   :  { %v1566_v43 = vpop.eup %1565 }
 0x32f   :  { %v849_v44 = vadd.f32 1.0, %v1566_v43 }
 0x330   :  { %v1568_v45 = vpop.eup %1567 }
 0x331   :  { %1569 = vrcp.f32 %v849_v44  ;;  %v850_v46 = vadd.f32 1.0, %v1568_v45 }
 0x333   :  { %1571 = vrcp.f32 %v850_v46 }
 0x33e   :  { %v1570_v47 = vpop.eup %1569 }
 0x33f   :  { %v855_v27 = vmul.f32 %v1570_v47, %v837_v36  ;;  %v1559_v36 = vld [vmem:[%s1961_s8 + $0x18] sm:$0xff]  }
 0x340   :  { %v1572_v48 = vpop.eup %1571  ;;  %1393 = vmatpush3.bf16.msra.mxu1 %v1559_v36 }
 0x341   :  { %v856_v29 = vmul.f32 %v1572_v48, %v839_v39  ;;  %v861_v50 = vmul.f32 %v855_v27, %v855_v27  ;;  %1394 = vmatprep.subr.bf16.mxu1 %v1747_v2  ;;  %v1562_v39 = vld [vmem:[%s1961_s8] sm:$0xff]  }
 0x343   :  { %v857_v49 = vadd.f32 %v856_v29, %v855_v27  ;;  %v862_v51 = vmul.f32 %v856_v29, %v856_v29 }
 0x344   :  { %1395 = vmatpush3.bf16.msra.mxu1 %v1560_v37 }
 0x345   :  { %858 = vadd.xlane.f32.xlu1 %v857_v49  ;;  %v863_v52 = vadd.f32 %v862_v51, %v861_v50  ;;  %1396 = vmatprep.subr.bf16.mxu1 %v1747_v2  ;;  %v1341_v49 = vld [vmem:[#allocation11] ss:$0 sm:$0xff] }
 0x347   :  { %864 = vadd.xlane.f32.xlu0 %v863_v52 }
 0x348   :  { %1397 = vmatpush3.bf16.msra.mxu1 %v1561_v38 }
 0x349   :  { %1398 = vmatprep.subr.bf16.mxu1 %v1747_v2 }
 0x34c   :  { %1399 = vmatpush3.bf16.msra.mxu1 %v1562_v39 }
 0x3ce   :  { %v859_v3 = vpop.xlane.xlu1 %858 }
 0x3cf   :  { %v860_v4 = vmul.f32 0.00390625, %v859_v3 }
 0x3d0   :  { %v865_v5 = vpop.xlane.xlu0 %864 }
 0x3d1   :  { %v866_v6 = vmul.f32 0.00390625, %v865_v5  ;;  %v867_v7 = vmul.f32 %v860_v4, %v860_v4  ;;  %v869_v10 = vsub.f32 %v855_v27, %v860_v4  ;;  %v870_v11 = vsub.f32 %v856_v29, %v860_v4 }
 0x3d3   :  { %v868_v8 = vsub.f32 %v866_v6, %v867_v7 }
 0x3d5   :  { %v871_v9 = vadd.f32 1e-05, %v868_v8  ;;  %v1351_v8 = vld [vmem:[#allocation13] ss:$0 sm:$0xff] }
 0x3d7   :  { %1573 = vrsqrt.f32 %v871_v9 }
 0x3e4   :  { %v1574_v12 = vpop.eup %1573 }
 0x3e5   :  { %v874_v13 = vmul.f32 %v1574_v12, %v870_v11  ;;  %v873_v14 = vmul.f32 %v1574_v12, %v869_v10  ;;  %v1352_v12 = vld [vmem:[#allocation2] ss:$0 sm:$0xff] }
 0x3e7   :  { %v876_v15 = vpack.c.bf16 %v874_v13, %v874_v13  ;;  %v875_v16 = vpack.c.bf16 %v873_v14, %v873_v14 }
 0x3e9   :  { %1044 = vmatprep.mubr.bf16.mxu0 %v876_v15 }
 0x3ea   :  { %1045 = vmatmul.mubr.bf16.vlgmr.msra.gmra.mxu0 %v875_v16 }
 0x4aa   :  { %v1369_v19 = vpop.f32.mrf.mxu0 }
 0x4ac   :  { %v1370_v21 = vpop.f32.mrf.mxu0 }
 0x4ad   :  { %v1371_v22 = vadd.f32 %v1370_v21, %v1369_v19 }
 0x4ae   :  { %v1372_v23 = vpop.f32.mrf.mxu0 }
 0x4af   :  { %v1047_v24 = vadd.f32 %v1371_v22, %v1323_v20 }
 0x4b0   :  { %v1373_v25 = vpop.f32.mrf.mxu0 }
 0x4b1   :  { %v1340_v26 = vmul.f32 -1.442695, %v1047_v24 }
 0x4b3   :  { %1575 = vpow2.f32 %v1340_v26 }
 0x4c0   :  { %v1576_v28 = vpop.eup %1575 }
 0x4c1   :  { %v1055_v30 = vadd.f32 1.0, %v1576_v28 }
 0x4c3   :  { %1577 = vrcp.f32 %v1055_v30 }
 0x4d0   :  { %v1578_v31 = vpop.eup %1577 }
 0x4d1   :  { %v1058_v32 = vmul.f32 %v1578_v31, %v1047_v24 }
 0x4d3   :  { %1059 = vadd.xlane.f32.xlu1 %v1058_v32  ;;  %v1063_v33 = vmul.f32 %v1058_v32, %v1058_v32 }
 0x4d5   :  { %1064 = vadd.xlane.f32.xlu0 %v1063_v33 }
 0x55c   :  { %v1060_v40 = vpop.xlane.xlu1 %1059 }
 0x55d   :  { %v1062_v41 = vmul.f32 0.0078125, %v1060_v40 }
 0x55e   :  { %v1065_v42 = vpop.xlane.xlu0 %1064 }
 0x55f   :  { %v1067_v43 = vmul.f32 %v1062_v41, %v1062_v41  ;;  %v1066_v44 = vmul.f32 0.0078125, %v1065_v42  ;;  %v1069_v47 = vsub.f32 %v1058_v32, %v1062_v41 }
 0x561   :  { %v1068_v45 = vsub.f32 %v1066_v44, %v1067_v43 }
 0x563   :  { %v1070_v46 = vadd.f32 1e-05, %v1068_v45 }
 0x565   :  { %1579 = vrsqrt.f32 %v1070_v46 }
 0x572   :  { %v1580_v27 = vpop.eup %1579 }
 0x573   :  { %v1072_v48 = vmul.f32 %v1580_v27, %v1069_v47 }
 0x575   :  { %v1073_v29 = vpack.c.bf16 %v1072_v48, %v1072_v48 }
 0x577   :  { %1401 = vmatmul.mubr.bf16.vlgmr.msra.gmra.mxu1 %v1073_v29 }
 0x637   :  { %v1179_v50 = vpop.f32.mrf.mxu1 }
 0x638   :  { %v1180_v51 = vadd.f32 %v1341_v49, %v1179_v50 }
 0x639   :  { %v1402_v52 = vpop.f32.mrf.mxu1 }
 0x63a   :  { %v1350_v53 = vmul.f32 -1.442695, %v1180_v51 }
 0x63b   :  { %v1182_v2 = vpop.f32.mrf.mxu1 }
 0x63c   :  { %1581 = vpow2.f32 %v1350_v53 }
 0x63d   :  { %v1403_v54 = vpop.f32.mrf.mxu1 }
 0x649   :  { %v1582_v55 = vpop.eup %1581 }
 0x64a   :  { %v1188_v56 = vadd.f32 1.0, %v1582_v55 }
 0x64c   :  { %1583 = vrcp.f32 %v1188_v56 }
 0x659   :  { %v1584_v57 = vpop.eup %1583 }
 0x65a   :  { %v1191_v58 = vmul.f32 %v1584_v57, %v1180_v51 }
 0x65c   :  { %v1193_v59 = vsel %vm1192_vm7, %v1191_v58, 0.0  ;;  %v1198_v60 = vmul.f32 %v1191_v58, %v1191_v58 }
 0x65d   :  { %1194 = vadd.xlane.f32.xlu1 %v1193_v59 }
 0x65e   :  { %v1199_v61 = vsel %vm1192_vm7, %v1198_v60, 0.0 }
 0x65f   :  { %1200 = vadd.xlane.f32.xlu0 %v1199_v61 }
 0x6e6   :  { %v1195_v62 = vpop.xlane.xlu1 %1194 }
 0x6e7   :  { %v1197_v63 = vmul.f32 0.015625, %v1195_v62 }
 0x6e8   :  { %v1201_v0 = vpop.xlane.xlu0 %1200 }
 0x6e9   :  { %v1203_v1 = vmul.f32 %v1197_v63, %v1197_v63  ;;  %v1202_v3 = vmul.f32 0.015625, %v1201_v0  ;;  %v1205_v6 = vsub.f32 %v1191_v58, %v1197_v63 }
 0x6eb   :  { %v1204_v4 = vsub.f32 %v1202_v3, %v1203_v1 }
 0x6ed   :  { %v1206_v5 = vadd.f32 1e-05, %v1204_v4 }
 0x6ef   :  { %1585 = vrsqrt.f32 %v1206_v5 }
 0x6fc   :  { %v1586_v7 = vpop.eup %1585 }
 0x6fd   :  { %v1208_v9 = vmul.f32 %v1586_v7, %v1205_v6 }
 0x6ff   :  { %v1216_v10 = vmul.f32 %v1351_v8, %v1208_v9 }
 0x701   :  { %v1217_v11 = vsel %vm1192_vm7, %v1216_v10, 0.0 }
 0x702   :  { %1218 = vadd.xlane.f32.xlu1 %v1217_v11 }
 0x78b   :  { %v1219_v13 = vpop.xlane.xlu1 %1218 }
 0x78c   :  { %v1227_v14 = vadd.f32 %v1352_v12, %v1219_v13 }
 0x78e   :  { %1229 = vst.msk [vmem:[%s1965_s12] sm:$0xff] %vm1228_vm11, %v1227_v14 }
 0x78f   :  { %1234 = vsyncpa [#allocation4], 1 }
 0x790   :  { %1235 = vsyncpa [#allocation6], 1 }
 0x791   :  { %1236 = vsyncpa [#allocation9], 1 }
 0x792   :  { %1237 = vsyncpa [#allocation12], 1 }

</bundles_post_ra>
